<compile_context>
chip_gen: v6e
topology: v6e:2x2x1
jax: 0.10.0
libtpu: 0.0.40
codegen_flags: <defaults>
</compile_context>

<pallas_src>
import numpy as np
import jax
import jax.numpy as jnp
from jax.experimental import pallas as pl
from jax.experimental.pallas import tpu as pltpu

_BN_EPS = 1e-5                 # nn.BatchNorm2d default
_LANE = 128                    # TPU lane width
_VMEM_LIMIT = 32 * 1024 * 1024 # explicit scoped-VMEM budget (safe on v5e/v6e/v7x)


def _round_up(x, m):
    return (x + m - 1) // m * m


# ----------------------------------------------------------------------------
# Pass 1 kernel: conv as a single folded-K matmul + per-tile BN partial stats
# ----------------------------------------------------------------------------
def _conv_stats_kernel(p_ref, w_ref, y_ref, stats_ref):
    # p_ref: (TR, Kp) bf16   w_ref: (Kp, Cp) bf16
    acc = jnp.dot(p_ref[...], w_ref[...], preferred_element_type=jnp.float32)
    y_ref[...] = acc                                   # pre-BN conv output, f32
    cp = acc.shape[1]
    col_sum = jnp.sum(acc, axis=0, keepdims=True)      # (1, Cp)
    col_sumsq = jnp.sum(acc * acc, axis=0, keepdims=True)
    stats_ref[...] = jnp.concatenate(
        [col_sum, col_sumsq, jnp.zeros((6, cp), jnp.float32)], axis=0)[None]


# ----------------------------------------------------------------------------
# Pass 2 kernels: normalize with precomputed scale/shift + ReLU (+ residual)
# ----------------------------------------------------------------------------
def _bn_relu_kernel(y_ref, scale_ref, shift_ref, out_ref):
    y = jnp.maximum(y_ref[...] * scale_ref[...] + shift_ref[...], 0.0)
    out_ref[...] = y.astype(out_ref.dtype)


def _bn_relu_add_kernel(y_ref, scale_ref, shift_ref, res_ref, out_ref):
    y = jnp.maximum(y_ref[...] * scale_ref[...] + shift_ref[...], 0.0)
    out_ref[...] = (y + res_ref[...]).astype(out_ref.dtype)


# ----------------------------------------------------------------------------
# Glue: im2col with taps folded into the lane/contraction axis (plain JAX)
# ----------------------------------------------------------------------------
def _im2col_folded(x_nhwc, kh, kw, stride):
    """(N,H,W,Cin) -> (N*Ho*Wo, kh*kw*Cin), channel ordering (dy, dx, ci)."""
    n, h, w, cin = x_nhwc.shape
    xpad = jnp.pad(x_nhwc, ((0, 0), (1, 1), (1, 1), (0, 0)))
    h_out = (h + 2 - kh) // stride + 1
    w_out = (w + 2 - kw) // stride + 1
    taps = []
    for dy in range(kh):
        for dx in range(kw):
            p = jax.lax.slice(
                xpad,
                (0, dy, dx, 0),
                (n, dy + stride * (h_out - 1) + 1,
                 dx + stride * (w_out - 1) + 1, cin),
                (1, stride, stride, 1))
            taps.append(p.reshape(n * h_out * w_out, cin))
    return jnp.concatenate(taps, axis=1), h_out, w_out


# ----------------------------------------------------------------------------
# One fused layer: Conv3x3 -> BatchNorm(batch stats) -> ReLU (-> +residual)
# ----------------------------------------------------------------------------
def _conv_bn_relu(x_nhwc, w_hwio, gamma, beta, *, stride,
                  residual_nhwc=None, out_dtype=jnp.float32, row_tile=512):
    n = x_nhwc.shape[0]
    kh, kw, cin, cout = w_hwio.shape

    # Folded im2col with bf16 operands for the MXU.
    # TODO(synk): build the 9 shifted views in-kernel from a halo-tiled NHWC DMA
    # (pl.ds) to avoid materializing the folded im2col tensor in HBM at all.
    patches, h_out, w_out = _im2col_folded(x_nhwc.astype(jnp.bfloat16),
                                           kh, kw, stride)
    rows = n * h_out * w_out
    k = kh * kw * cin

    # Lane-dense padding of contraction and output-channel axes; row tiling.
    kp = _round_up(k, _LANE)
    cp = _round_up(cout, _LANE)
    tr = _round_up(min(row_tile, rows), 8)
    rows_p = _round_up(rows, tr)
    num_tiles = rows_p // tr

    patches_p = jnp.pad(patches, ((0, rows_p - rows), (0, kp - k)))
    w_p = jnp.pad(w_hwio.reshape(k, cout).astype(jnp.bfloat16),
                  ((0, kp - k), (0, cp - cout)))
    gamma_p = jnp.pad(gamma.astype(jnp.float32), (0, cp - cout))
    beta_p = jnp.pad(beta.astype(jnp.float32), (0, cp - cout))

    # ---- pass 1: conv + per-tile partial stats (row axis fully parallel) ----
    y_conv, stats = pl.pallas_call(
        _conv_stats_kernel,
        grid=(num_tiles,),
        in_specs=[pl.BlockSpec((tr, kp), lambda i: (i, 0)),
                  pl.BlockSpec((kp, cp), lambda i: (0, 0))],
        out_specs=[pl.BlockSpec((tr, cp), lambda i: (i, 0)),
                   pl.BlockSpec((1, 8, cp), lambda i: (i, 0, 0))],
        out_shape=[jax.ShapeDtypeStruct((rows_p, cp), jnp.float32),
                   jax.ShapeDtypeStruct((num_tiles, 8, cp), jnp.float32)],
        compiler_params=pltpu.CompilerParams(
            dimension_semantics=("parallel",),
            vmem_limit_bytes=_VMEM_LIMIT),
        cost_estimate=pl.CostEstimate(
            flops=2 * rows_p * kp * cp,
            transcendentals=0,
            bytes_accessed=rows_p * kp * 2 + kp * cp * 2
            + rows_p * cp * 4 + num_tiles * 8 * cp * 4),
    )(patches_p, w_p)

    # ---- tiny global reduction -> per-channel scale/shift (plain JAX) -------
    # Padded rows/channels are all-zero so they contribute nothing to the sums;
    # we divide by the true row count. Conv bias is intentionally absent: the
    # mean subtraction of training-mode BN cancels a per-channel bias exactly.
    totals = jnp.sum(stats, axis=0)                        # (8, Cp)
    inv_cnt = 1.0 / float(rows)
    mean = totals[0] * inv_cnt
    var = jnp.maximum(totals[1] * inv_cnt - mean * mean, 0.0)
    scale = gamma_p * jax.lax.rsqrt(var + _BN_EPS)
    shift = beta_p - mean * scale
    scale2d = scale.reshape(1, cp)
    shift2d = shift.reshape(1, cp)

    # ---- pass 2: normalize + ReLU (+ residual add) ---------------------------
    add_residual = residual_nhwc is not None
    args = [y_conv, scale2d, shift2d]
    in_specs = [pl.BlockSpec((tr, cp), lambda i: (i, 0)),
                pl.BlockSpec((1, cp), lambda i: (0, 0)),
                pl.BlockSpec((1, cp), lambda i: (0, 0))]
    if add_residual:
        res2d = residual_nhwc.astype(jnp.float32).reshape(rows, cout)
        res_p = jnp.pad(res2d, ((0, rows_p - rows), (0, cp - cout)))
        args.append(res_p)
        in_specs.append(pl.BlockSpec((tr, cp), lambda i: (i, 0)))

    out_itemsize = jnp.dtype(out_dtype).itemsize
    out2d = pl.pallas_call(
        _bn_relu_add_kernel if add_residual else _bn_relu_kernel,
        grid=(num_tiles,),
        in_specs=in_specs,
        out_specs=pl.BlockSpec((tr, cp), lambda i: (i, 0)),
        out_shape=jax.ShapeDtypeStruct((rows_p, cp), out_dtype),
        compiler_params=pltpu.CompilerParams(
            dimension_semantics=("parallel",),
            vmem_limit_bytes=_VMEM_LIMIT),
        cost_estimate=pl.CostEstimate(
            flops=4 * rows_p * cp,
            transcendentals=0,
            bytes_accessed=rows_p * cp * (4 + out_itemsize)
            + (rows_p * cp * 4 if add_residual else 0)),
    )(*args)

    return out2d[:rows, :cout].reshape(n, h_out, w_out, cout)


def block_forward(x_nchw, params, stride, row_tile=512):
    """Pallas implementation of Block.forward. Input/output are NCHW float32."""
    x = jnp.transpose(x_nchw, (0, 2, 3, 1)).astype(jnp.float32)     # NHWC
    y = _conv_bn_relu(x, params["w1"], params["g1"], params["be1"],
                      stride=stride, out_dtype=jnp.bfloat16,        # lay1 act bf16
                      row_tile=row_tile)
    residual = x if stride == 1 else None
    y = _conv_bn_relu(y, params["w2"], params["g2"], params["be2"],
                      stride=1, residual_nhwc=residual,
                      out_dtype=jnp.float32, row_tile=row_tile)
    return jnp.transpose(y, (0, 3, 1, 2))                           # NCHW


# ----------------------------------------------------------------------------
# Pure-JAX reference (mirrors the kernel's intentional bf16 quantization points)
# ----------------------------------------------------------------------------
def _ref_conv_bn_relu(x, w, b, gamma, beta, stride):
    xq = x.astype(jnp.bfloat16).astype(jnp.float32)
    wq = w.astype(jnp.bfloat16).astype(jnp.float32)
    y = jax.lax.conv_general_dilated(
        xq, wq, window_strides=(stride, stride), padding=((1, 1), (1, 1)),
        dimension_numbers=("NHWC", "HWIO", "NHWC"))
    y = y + b[None, None, None, :]      # cancels exactly under train-mode BN
    mean = jnp.mean(y, axis=(0, 1, 2), keepdims=True)
    var = jnp.mean((y - mean) ** 2, axis=(0, 1, 2), keepdims=True)
    y = (y - mean) * jax.lax.rsqrt(var + _BN_EPS)
    y = y * gamma[None, None, None, :] + beta[None, None, None, :]
    return jnp.maximum(y, 0.0)


def block_forward_ref(x_nchw, params, stride):
    x = jnp.transpose(x_nchw, (0, 2, 3, 1)).astype(jnp.float32)
    y = _ref_conv_bn_relu(x, params["w1"], params["b1"], params["g1"],
                          params["be1"], stride)
    y = y.astype(jnp.bfloat16).astype(jnp.float32)   # lay1 activation kept bf16
    y = _ref_conv_bn_relu(y, params["w2"], params["b2"], params["g2"],
                          params["be2"], 1)
    if stride == 1:
        y = x + y
    return jnp.transpose(y, (0, 3, 1, 2))


if __name__ == "__main__":
    key = jax.random.PRNGKey(0)

    def make_params(k, in_ch, out_ch):
        ks = jax.random.split(k, 8)
        return {
            "w1": jax.random.normal(ks[0], (3, 3, in_ch, in_ch), jnp.float32) * 0.1,
            "b1": jax.random.normal(ks[1], (in_ch,), jnp.float32) * 0.1,
            "g1": 1.0 + 0.1 * jax.random.normal(ks[2], (in_ch,), jnp.float32),
            "be1": 0.1 * jax.random.normal(ks[3], (in_ch,), jnp.float32),
            "w2": jax.random.normal(ks[4], (3, 3, in_ch, out_ch), jnp.float32) * 0.1,
            "b2": jax.random.normal(ks[5], (out_ch,), jnp.float32) * 0.1,
            "g2": 1.0 + 0.1 * jax.random.normal(ks[6], (out_ch,), jnp.float32),
            "be2": 0.1 * jax.random.normal(ks[7], (out_ch,), jnp.float32),
        }

    fwd = jax.jit(block_forward, static_argnames=("stride", "row_tile"))

    kx, kp1, kp2 = jax.random.split(key, 3)
    x = jax.random.normal(kx, (2, 4, 16, 16), jnp.float32)          # NCHW

    # Case 1: stride=1 (residual path). row_tile=128 exercises 4 row tiles at
    # this demo size (rows = 2*16*16 = 512); production default is 512.
    params1 = make_params(kp1, 4, 4)
    out1 = jax.block_until_ready(fwd(x, params1, stride=1, row_tile=128))
    ref1 = jax.block_until_ready(block_forward_ref(x, params1, 1))
    assert out1.shape == (2, 4, 16, 16)
    np.testing.assert_allclose(np.asarray(out1), np.asarray(ref1),
                               rtol=1e-2, atol=1e-2)

    # Case 2: stride=2 (no residual), channel change.
    params2 = make_params(kp2, 4, 8)
    out2 = jax.block_until_ready(fwd(x, params2, stride=2, row_tile=128))
    ref2 = jax.block_until_ready(block_forward_ref(x, params2, 2))
    assert out2.shape == (2, 8, 8, 8)
    np.testing.assert_allclose(np.asarray(out2), np.asarray(ref2),
                               rtol=1e-2, atol=1e-2)

    print("KERNEL_OK")
</pallas_src>

<mosaic_0001>
module attributes {stable_mosaic.version = 11 : i64} {
  func.func @_conv_stats_kernel(%arg0: i32, %arg1: memref<128x128xbf16, #tpu.memory_space<vmem>>, %arg2: memref<128x128xbf16, #tpu.memory_space<vmem>>, %arg3: memref<128x128xf32, #tpu.memory_space<vmem>>, %arg4: memref<1x8x128xf32, #tpu.memory_space<vmem>>) attributes {dimension_semantics = [#tpu.dimension_semantics<parallel>], iteration_bounds = array<i64: 4>, scalar_prefetch = 0 : i64, scratch_operands = 0 : i64, tpu.core_type = #tpu.core_type<tc>, window_params = [{transform_indices = @transform_0, window_bounds = array<i64: 128, 128>}, {pipeline_mode = #tpu.pipeline_mode<synchronous>, transform_indices = @transform_1, window_bounds = array<i64: 128, 128>}, {transform_indices = @transform_2, window_bounds = array<i64: 128, 128>}, {transform_indices = @transform_3, window_bounds = array<i64: 1, 8, 128>}]} {
    %c0 = arith.constant 0 : index
    %c0_0 = arith.constant 0 : index
    %0 = vector.load %arg1[%c0, %c0_0] : memref<128x128xbf16, #tpu.memory_space<vmem>>, vector<128x128xbf16>
    %c0_1 = arith.constant 0 : index
    %c0_2 = arith.constant 0 : index
    %1 = vector.load %arg2[%c0_1, %c0_2] : memref<128x128xbf16, #tpu.memory_space<vmem>>, vector<128x128xbf16>
    %cst = arith.constant dense<0.000000e+00> : vector<128x128xf32>
    %2 = tpu.matmul %0, %1, %cst {dimension_numbers = #tpu.dot_dimension_numbers<[1], [0], [0], [1], [0, 0, 1, 1], [], []>} : vector<128x128xbf16>, vector<128x128xbf16>, vector<128x128xf32> -> vector<128x128xf32>
    %c0_3 = arith.constant 0 : index
    %c0_4 = arith.constant 0 : index
    %3 = vector.load %arg3[%c0_3, %c0_4] : memref<128x128xf32, #tpu.memory_space<vmem>>, vector<128x128xf32>
    tpu.vector_store %arg3[%c0_3, %c0_4], %2 {strides = array<i32>} : memref<128x128xf32, #tpu.memory_space<vmem>>, vector<128x128xf32>,
    %cst_5 = arith.constant dense<0.000000e+00> : vector<128xf32>
    %4 = vector.multi_reduction <add>, %2, %cst_5 [0] : vector<128x128xf32> to vector<128xf32>
    %5 = vector.shape_cast %4 : vector<128xf32> to vector<1x128xf32>
    %6 = arith.mulf %2, %2 : vector<128x128xf32>
    %cst_6 = arith.constant dense<0.000000e+00> : vector<128xf32>
    %7 = vector.multi_reduction <add>, %6, %cst_6 [0] : vector<128x128xf32> to vector<128xf32>
    %8 = vector.shape_cast %7 : vector<128xf32> to vector<1x128xf32>
    %cst_7 = arith.constant 0.000000e+00 : f32
    %9 = vector.broadcast %cst_7 : f32 to vector<6x128xf32>
    %10 = tpu.concatenate %5, %8, %9 in 0 : vector<1x128xf32>, vector<1x128xf32>, vector<6x128xf32> -> vector<8x128xf32>
    %11 = vector.shape_cast %10 : vector<8x128xf32> to vector<1x8x128xf32>
    %c0_8 = arith.constant 0 : index
    %c0_9 = arith.constant 0 : index
    %c0_10 = arith.constant 0 : index
    %12 = vector.load %arg4[%c0_8, %c0_9, %c0_10] : memref<1x8x128xf32, #tpu.memory_space<vmem>>, vector<1x8x128xf32>
    tpu.vector_store %arg4[%c0_8, %c0_9, %c0_10], %11 {strides = array<i32>} : memref<1x8x128xf32, #tpu.memory_space<vmem>>, vector<1x8x128xf32>,
    return
  }
  func.func @transform_0(%arg0: i32) -> (i32, i32) {
    %c0_i32 = arith.constant 0 : i32
    %c0_i32_0 = arith.constant 0 : i32
    return %arg0, %c0_i32 : i32, i32
  }
  func.func @transform_1(%arg0: i32) -> (i32, i32) {
    %c0_i32 = arith.constant 0 : i32
    %c0_i32_0 = arith.constant 0 : i32
    %c0_i32_1 = arith.constant 0 : i32
    return %c0_i32, %c0_i32_0 : i32, i32
  }
  func.func @transform_2(%arg0: i32) -> (i32, i32) {
    %c0_i32 = arith.constant 0 : i32
    %c0_i32_0 = arith.constant 0 : i32
    return %arg0, %c0_i32 : i32, i32
  }
  func.func @transform_3(%arg0: i32) -> (i32, i32, i32) {
    %c0_i32 = arith.constant 0 : i32
    %c0_i32_0 = arith.constant 0 : i32
    %c0_i32_1 = arith.constant 0 : i32
    return %arg0, %c0_i32, %c0_i32_0 : i32, i32, i32
  }
}

module attributes {stable_mosaic.version = 11 : i64} {
  func.func @_bn_relu_kernel(%arg0: i32, %arg1: memref<128x128xf32, #tpu.memory_space<vmem>>, %arg2: memref<1x128xf32, #tpu.memory_space<vmem>>, %arg3: memref<1x128xf32, #tpu.memory_space<vmem>>, %arg4: memref<128x128xbf16, #tpu.memory_space<vmem>>) attributes {dimension_semantics = [#tpu.dimension_semantics<parallel>], iteration_bounds = array<i64: 4>, scalar_prefetch = 0 : i64, scratch_operands = 0 : i64, tpu.core_type = #tpu.core_type<tc>, window_params = [{transform_indices = @transform_0, window_bounds = array<i64: 128, 128>}, {pipeline_mode = #tpu.pipeline_mode<synchronous>, transform_indices = @transform_1, window_bounds = array<i64: 1, 128>}, {pipeline_mode = #tpu.pipeline_mode<synchronous>, transform_indices = @transform_2, window_bounds = array<i64: 1, 128>}, {transform_indices = @transform_3, window_bounds = array<i64: 128, 128>}]} {
    %c0 = arith.constant 0 : index
    %c0_0 = arith.constant 0 : index
    %0 = vector.load %arg1[%c0, %c0_0] : memref<128x128xf32, #tpu.memory_space<vmem>>, vector<128x128xf32>
    %c0_1 = arith.constant 0 : index
    %c0_2 = arith.constant 0 : index
    %1 = vector.load %arg2[%c0_1, %c0_2] : memref<1x128xf32, #tpu.memory_space<vmem>>, vector<1x128xf32>
    %2 = vector.broadcast %1 : vector<1x128xf32> to vector<128x128xf32>
    %3 = arith.mulf %0, %2 : vector<128x128xf32>
    %c0_3 = arith.constant 0 : index
    %c0_4 = arith.constant 0 : index
    %4 = vector.load %arg3[%c0_3, %c0_4] : memref<1x128xf32, #tpu.memory_space<vmem>>, vector<1x128xf32>
    %5 = vector.broadcast %4 : vector<1x128xf32> to vector<128x128xf32>
    %6 = arith.addf %3, %5 : vector<128x128xf32>
    %cst = arith.constant 0.000000e+00 : f32
    %7 = vector.broadcast %cst : f32 to vector<128x128xf32>
    %8 = arith.maximumf %6, %7 : vector<128x128xf32>
    %9 = arith.truncf %8 : vector<128x128xf32> to vector<128x128xbf16>
    %c0_5 = arith.constant 0 : index
    %c0_6 = arith.constant 0 : index
    %10 = vector.load %arg4[%c0_5, %c0_6] : memref<128x128xbf16, #tpu.memory_space<vmem>>, vector<128x128xbf16>
    tpu.vector_store %arg4[%c0_5, %c0_6], %9 {strides = array<i32>} : memref<128x128xbf16, #tpu.memory_space<vmem>>, vector<128x128xbf16>,
    return
  }
  func.func @transform_0(%arg0: i32) -> (i32, i32) {
    %c0_i32 = arith.constant 0 : i32
    %c0_i32_0 = arith.constant 0 : i32
    return %arg0, %c0_i32 : i32, i32
  }
  func.func @transform_1(%arg0: i32) -> (i32, i32) {
    %c0_i32 = arith.constant 0 : i32
    %c0_i32_0 = arith.constant 0 : i32
    %c0_i32_1 = arith.constant 0 : i32
    return %c0_i32, %c0_i32_0 : i32, i32
  }
  func.func @transform_2(%arg0: i32) -> (i32, i32) {
    %c0_i32 = arith.constant 0 : i32
    %c0_i32_0 = arith.constant 0 : i32
    %c0_i32_1 = arith.constant 0 : i32
    return %c0_i32, %c0_i32_0 : i32, i32
  }
  func.func @transform_3(%arg0: i32) -> (i32, i32) {
    %c0_i32 = arith.constant 0 : i32
    %c0_i32_0 = arith.constant 0 : i32
    return %arg0, %c0_i32 : i32, i32
  }
}

module attributes {stable_mosaic.version = 11 : i64} {
  func.func @_bn_relu_add_kernel(%arg0: i32, %arg1: memref<128x128xf32, #tpu.memory_space<vmem>>, %arg2: memref<1x128xf32, #tpu.memory_space<vmem>>, %arg3: memref<1x128xf32, #tpu.memory_space<vmem>>, %arg4: memref<128x128xf32, #tpu.memory_space<vmem>>, %arg5: memref<128x128xf32, #tpu.memory_space<vmem>>) attributes {dimension_semantics = [#tpu.dimension_semantics<parallel>], iteration_bounds = array<i64: 4>, scalar_prefetch = 0 : i64, scratch_operands = 0 : i64, tpu.core_type = #tpu.core_type<tc>, window_params = [{transform_indices = @transform_0, window_bounds = array<i64: 128, 128>}, {pipeline_mode = #tpu.pipeline_mode<synchronous>, transform_indices = @transform_1, window_bounds = array<i64: 1, 128>}, {pipeline_mode = #tpu.pipeline_mode<synchronous>, transform_indices = @transform_2, window_bounds = array<i64: 1, 128>}, {transform_indices = @transform_3, window_bounds = array<i64: 128, 128>}, {transform_indices = @transform_4, window_bounds = array<i64: 128, 128>}]} {
    %c0 = arith.constant 0 : index
    %c0_0 = arith.constant 0 : index
    %0 = vector.load %arg1[%c0, %c0_0] : memref<128x128xf32, #tpu.memory_space<vmem>>, vector<128x128xf32>
    %c0_1 = arith.constant 0 : index
    %c0_2 = arith.constant 0 : index
    %1 = vector.load %arg2[%c0_1, %c0_2] : memref<1x128xf32, #tpu.memory_space<vmem>>, vector<1x128xf32>
    %2 = vector.broadcast %1 : vector<1x128xf32> to vector<128x128xf32>
    %3 = arith.mulf %0, %2 : vector<128x128xf32>
    %c0_3 = arith.constant 0 : index
    %c0_4 = arith.constant 0 : index
    %4 = vector.load %arg3[%c0_3, %c0_4] : memref<1x128xf32, #tpu.memory_space<vmem>>, vector<1x128xf32>
    %5 = vector.broadcast %4 : vector<1x128xf32> to vector<128x128xf32>
    %6 = arith.addf %3, %5 : vector<128x128xf32>
    %cst = arith.constant 0.000000e+00 : f32
    %7 = vector.broadcast %cst : f32 to vector<128x128xf32>
    %8 = arith.maximumf %6, %7 : vector<128x128xf32>
    %c0_5 = arith.constant 0 : index
    %c0_6 = arith.constant 0 : index
    %9 = vector.load %arg4[%c0_5, %c0_6] : memref<128x128xf32, #tpu.memory_space<vmem>>, vector<128x128xf32>
    %10 = arith.addf %8, %9 : vector<128x128xf32>
    %c0_7 = arith.constant 0 : index
    %c0_8 = arith.constant 0 : index
    %11 = vector.load %arg5[%c0_7, %c0_8] : memref<128x128xf32, #tpu.memory_space<vmem>>, vector<128x128xf32>
    tpu.vector_store %arg5[%c0_7, %c0_8], %10 {strides = array<i32>} : memref<128x128xf32, #tpu.memory_space<vmem>>, vector<128x128xf32>,
    return
  }
  func.func @transform_0(%arg0: i32) -> (i32, i32) {
    %c0_i32 = arith.constant 0 : i32
    %c0_i32_0 = arith.constant 0 : i32
    return %arg0, %c0_i32 : i32, i32
  }
  func.func @transform_1(%arg0: i32) -> (i32, i32) {
    %c0_i32 = arith.constant 0 : i32
    %c0_i32_0 = arith.constant 0 : i32
    %c0_i32_1 = arith.constant 0 : i32
    return %c0_i32, %c0_i32_0 : i32, i32
  }
  func.func @transform_2(%arg0: i32) -> (i32, i32) {
    %c0_i32 = arith.constant 0 : i32
    %c0_i32_0 = arith.constant 0 : i32
    %c0_i32_1 = arith.constant 0 : i32
    return %c0_i32, %c0_i32_0 : i32, i32
  }
  func.func @transform_3(%arg0: i32) -> (i32, i32) {
    %c0_i32 = arith.constant 0 : i32
    %c0_i32_0 = arith.constant 0 : i32
    return %arg0, %c0_i32 : i32, i32
  }
  func.func @transform_4(%arg0: i32) -> (i32, i32) {
    %c0_i32 = arith.constant 0 : i32
    %c0_i32_0 = arith.constant 0 : i32
    return %arg0, %c0_i32 : i32, i32
  }
}

</mosaic_0001>

<bundles_post_ra>
// kernel: block_forward.5
= control target key start
LH: loop header
LB: loop body
LE: loop exit
PB: predicated region body
PF: predicated region fallthrough
CT: control target
= control target key end

     0   :  { %s516_s12 = smov 0   ;;  %s607_s0 = inlined_call_operand.vmem [shape: f32[512,128], index: 0, kind: input, shape index: {}]   ;;  %s608_s1 = inlined_call_operand.vmem [shape: f32[1,128], index: 1, kind: input, shape index: {}]   ;;  %s609_s2 = inlined_call_operand.vmem [shape: f32[1,128], index: 2, kind: input, shape index: {}]   ;;  %s610_s3 = inlined_call_operand.vmem [shape: bf16[512,128], index: 3, kind: output, shape index: {}]  }
   0x1 LB: > { %s388_s13 = sadd.s32 4294967295, %s494_s12   ;;  %p392_p0 = scmp.ge.s32.totalorder %s494_s12, 1  ;;  %s494_s12 = sphi %s516_s12, %s13_s12  }
   0x2   : > { %p138_p1 = scmp.lt.s32.totalorder %s494_s12, 5 }
   0x4   : > { %p139_p2 = pnand %p392_p0, %p138_p1 }
   0x5   : > { %s393_s14 = sshll.u32 (!%p139_p2), %s388_s13, 4 }
   0x6   : > { %142 = sbr.rel (%p139_p2) target bundleno = 35 (0x23), region = 32  ;;  %p163_p3 = scmp.lt.s32.totalorder (!%p139_p2), %s393_s14, 63 }
   0xb   : > { %s612_s14 = smov (!%p163_p3, %s393_s14), 63  ;;  %v530_v0 = vld [vmem:[%s608_s1] ss:$0 sm:$0xff] }
   0xc   : > { %s394_s15 = sshll.u32 %s612_s14, 3  ;;  %v540_v1 = vld [vmem:[%s609_s2] ss:$0 sm:$0xff]  ;;  %s396_s23 = sshll.u32 %s612_s14, 2 }
   0xd   : > { %s535_s20 = scalar_lea.vmem %s607_s0, %s394_s15  ;;  %s572_s26 = scalar_lea.vmem %s610_s3, %s396_s23 }
   0xe   : > { %v174_v2 = vld [vmem:[%s535_s20] sm:$0xff]  ;;  %v175_v3 = vld [vmem:[%s535_s20 + $0x8] sm:$0xff]  ;;  %v176_v4 = vld [vmem:[%s535_s20 + $0x10] sm:$0xff] }
   0xf   : > { %v197_v5 = vmul.f32 %v530_v0, %v174_v2  ;;  %v198_v6 = vmul.f32 %v530_v0, %v175_v3  ;;  %v177_v7 = vld [vmem:[%s535_s20 + $0x18] sm:$0xff]  ;;  %v199_v8 = vmul.f32 %v530_v0, %v176_v4  ;;  %v178_v9 = vld [vmem:[%s535_s20 + $0x20] sm:$0xff]  ;;  %v179_v10 = vld [vmem:[%s535_s20 + $0x28] sm:$0xff] }
  0x10   : > { %v200_v11 = vmul.f32 %v530_v0, %v177_v7  ;;  %v201_v12 = vmul.f32 %v530_v0, %v178_v9  ;;  %v202_v13 = vmul.f32 %v530_v0, %v179_v10  ;;  %v180_v14 = vld [vmem:[%s535_s20 + $0x30] sm:$0xff]  ;;  %v181_v15 = vld [vmem:[%s535_s20 + $0x38] sm:$0xff]  ;;  %v182_v24 = vld [vmem:[%s535_s20 + $0x40] sm:$0xff] }
  0x11   : > { %v220_v16 = vadd.f32 %v540_v1, %v197_v5  ;;  %v221_v17 = vadd.f32 %v540_v1, %v198_v6  ;;  %v222_v18 = vadd.f32 %v540_v1, %v199_v8  ;;  %v203_v19 = vmul.f32 %v530_v0, %v180_v14  ;;  %v183_v25 = vld [vmem:[%s535_s20 + $0x48] sm:$0xff]  ;;  %v184_v30 = vld [vmem:[%s535_s20 + $0x50] sm:$0xff]  ;;  %v185_v35 = vld [vmem:[%s535_s20 + $0x58] sm:$0xff] }
  0x12   : > { %v223_v20 = vadd.f32 %v540_v1, %v200_v11  ;;  %v224_v21 = vadd.f32 %v540_v1, %v201_v12  ;;  %v225_v22 = vadd.f32 %v540_v1, %v202_v13  ;;  %v204_v23 = vmul.f32 %v530_v0, %v181_v15  ;;  %v186_v36 = vld [vmem:[%s535_s20 + $0x60] sm:$0xff]  ;;  %v187_v41 = vld [vmem:[%s535_s20 + $0x68] sm:$0xff]  ;;  %v188_v42 = vld [vmem:[%s535_s20 + $0x70] sm:$0xff] }
  0x13   : > { %v236_v26 = vmax.f32 %v220_v16, 0.0  ;;  %v237_v27 = vmax.f32 %v221_v17, 0.0  ;;  %v238_v28 = vmax.f32 %v222_v18, 0.0  ;;  %v226_v29 = vadd.f32 %v540_v1, %v203_v19  ;;  %v189_v51 = vld [vmem:[%s535_s20 + $0x78] sm:$0xff] }
  0x14   : > { %v239_v31 = vmax.f32 %v223_v20, 0.0  ;;  %v240_v32 = vmax.f32 %v224_v21, 0.0  ;;  %v241_v33 = vmax.f32 %v225_v22, 0.0  ;;  %v227_v34 = vadd.f32 %v540_v1, %v204_v23 }
  0x15   : > { %v436_v37 = vpack.c.bf16 %v237_v27, %v236_v26  ;;  %v242_v38 = vmax.f32 %v226_v29, 0.0  ;;  %v205_v39 = vmul.f32 %v530_v0, %v182_v24  ;;  %v206_v40 = vmul.f32 %v530_v0, %v183_v25 }
  0x16   : > { %v441_v43 = vpack.c.bf16 %v239_v31, %v238_v28  ;;  %v446_v44 = vpack.c.bf16 %v241_v33, %v240_v32  ;;  %v243_v45 = vmax.f32 %v227_v34, 0.0  ;;  %v207_v46 = vmul.f32 %v530_v0, %v184_v30 }
  0x17   : > { %437 = vst [vmem:[%s572_s26] sm:$0xff] %v436_v37   ;;  %v228_v47 = vadd.f32 %v540_v1, %v205_v39  ;;  %v229_v48 = vadd.f32 %v540_v1, %v206_v40  ;;  %v208_v49 = vmul.f32 %v530_v0, %v185_v35  ;;  %v209_v50 = vmul.f32 %v530_v0, %v186_v36 }
  0x18   : > { %473 = vst [vmem:[%s572_s26 + $0x8] sm:$0xff] %v441_v43   ;;  %474 = vst [vmem:[%s572_s26 + $0x10] sm:$0xff] %v446_v44   ;;  %v451_v52 = vpack.c.bf16 %v243_v45, %v242_v38  ;;  %v230_v53 = vadd.f32 %v540_v1, %v207_v46  ;;  %v210_v54 = vmul.f32 %v530_v0, %v187_v41 }
  0x19   : > { %v211_v55 = vmul.f32 %v530_v0, %v188_v42  ;;  %v244_v56 = vmax.f32 %v228_v47, 0.0  ;;  %v245_v57 = vmax.f32 %v229_v48, 0.0  ;;  %v231_v58 = vadd.f32 %v540_v1, %v208_v49 }
  0x1a   : > { %v232_v59 = vadd.f32 %v540_v1, %v209_v50  ;;  %475 = vst [vmem:[%s572_s26 + $0x18] sm:$0xff] %v451_v52   ;;  %v246_v60 = vmax.f32 %v230_v53, 0.0  ;;  %v233_v61 = vadd.f32 %v540_v1, %v210_v54  ;;  %v212_v62 = vmul.f32 %v530_v0, %v189_v51 }
  0x1b   : > { %v234_v63 = vadd.f32 %v540_v1, %v211_v55  ;;  %v456_v2 = vpack.c.bf16 %v245_v57, %v244_v56  ;;  %v247_v3 = vmax.f32 %v231_v58, 0.0 }
  0x1c   : > { %v248_v4 = vmax.f32 %v232_v59, 0.0  ;;  %v249_v5 = vmax.f32 %v233_v61, 0.0  ;;  %v235_v6 = vadd.f32 %v540_v1, %v212_v62 }
  0x1d   : > { %v250_v7 = vmax.f32 %v234_v63, 0.0  ;;  %476 = vst [vmem:[%s572_s26 + $0x20] sm:$0xff] %v456_v2   ;;  %v461_v8 = vpack.c.bf16 %v247_v3, %v246_v60 }
  0x1e   : > { %v466_v9 = vpack.c.bf16 %v249_v5, %v248_v4  ;;  %v251_v10 = vmax.f32 %v235_v6, 0.0 }
  0x1f   : > { %477 = vst [vmem:[%s572_s26 + $0x28] sm:$0xff] %v461_v8  }
  0x20   : > { %478 = vst [vmem:[%s572_s26 + $0x30] sm:$0xff] %v466_v9   ;;  %v471_v11 = vpack.c.bf16 %v251_v10, %v250_v7 }
  0x22   : > { %479 = vst [vmem:[%s572_s26 + $0x38] sm:$0xff] %v471_v11  }
  0x23 PF: > { %s13_s12 = sadd.s32 1, %s494_s12  }
  0x24   : > { %p10_p4 = scmp.ge.s32.totalorder %s13_s12, 6  }
  0x26   :  { %12 = sbr.rel (!%p10_p4) target bundleno = 1 (0x1), region = 62 }

// kernel: block_forward.4
= control target key start
LH: loop header
LB: loop body
LE: loop exit
PB: predicated region body
PF: predicated region fallthrough
CT: control target
= control target key end

     0   :  { %s721_s12 = smov 0   ;;  %s802_s0 = inlined_call_operand.vmem [shape: bf16[512,128], index: 0, kind: input, shape index: {}]   ;;  %s803_s1 = inlined_call_operand.vmem [shape: bf16[128,128], index: 1, kind: input, shape index: {}]   ;;  %s804_s2 = inlined_call_operand.vmem [shape: f32[512,128], index: 2, kind: output, shape index: {0}]   ;;  %s805_s3 = inlined_call_operand.vmem [shape: f32[4,8,128], index: 3, kind: output, shape index: {1}]  }
   0x1 LB: > { %s727_s13 = sadd.s32 4294967295, %s699_s12   ;;  %p581_p0 = scmp.ge.s32.totalorder %s699_s12, 1  ;;  %s699_s12 = sphi %s721_s12, %s14_s12  }
   0x2   : > { %p141_p1 = scmp.lt.s32.totalorder %s699_s12, 5 }
   0x4   : > { %p142_p2 = pnand %p581_p0, %p141_p1 }
   0x5   : > { %s582_s16 = sshll.u32 (!%p142_p2), %s727_s13, 4  ;;  %p181_p4 = scmp.lt.s32.totalorder (!%p142_p2), %s727_s13, 3 }
   0x6   : > { %145 = sbr.rel (%p142_p2) target bundleno = 290 (0x122), region = 28  ;;  %p170_p3 = scmp.lt.s32.totalorder (!%p142_p2), %s582_s16, 63 }
   0xb   : > { %v677_v0 = vld [vmem:[%s803_s1 + $0x38] sm:$0xff]   ;;  %v678_v1 = vld [vmem:[%s803_s1 + $0x30] sm:$0xff]   ;;  %s807_s16 = smov (!%p170_p3, %s582_s16), 63  ;;  %v679_v2 = vld [vmem:[%s803_s1 + $0x28] sm:$0xff]   ;;  %s809_s13 = smov (!%p181_p4, %s727_s13), 3  ;;  %vm485_vm0 = vcmask 1040384  }
   0xc   : > { %621 = vmatprep.subr.bf16.mxu0 %v677_v0  ;;  %653 = vmatprep.subr.bf16.mxu1 %v677_v0  ;;  %s583_s21 = sshll.u32 %s807_s16, 2  ;;  %v680_v3 = vld [vmem:[%s803_s1 + $0x20] sm:$0xff]   ;;  %v681_v5 = vld [vmem:[%s803_s1 + $0x18] sm:$0xff]   ;;  %v682_v7 = vld [vmem:[%s803_s1 + $0x10] sm:$0xff]   ;;  %s585_s8 = sshll.u32 %s807_s16, 3  ;;  %vm487_vm1 = vcmask 1041408  }
   0xd   : > { %622 = vmatpush3.bf16.msra.mxu0 %v677_v0  ;;  %661 = vmatpush3.bf16.msra.mxu1 %v677_v0  ;;  %s747_s24 = scalar_lea.vmem %s802_s0, %s583_s21  ;;  %v683_v8 = vld [vmem:[%s803_s1 + $0x8] sm:$0xff]   ;;  %v684_v9 = vld [vmem:[%s803_s1] sm:$0xff]   ;;  %s776_s11 = scalar_lea.vmem %s804_s2, %s585_s8 }
   0xe   : > { %623 = vmatprep.subr.bf16.mxu0 %v678_v1  ;;  %654 = vmatprep.subr.bf16.mxu1 %v678_v1  ;;  %v685_v4 = vld [vmem:[%s747_s24] sm:$0xff]   ;;  %v686_v10 = vld [vmem:[%s747_s24 + $0x8] sm:$0xff]   ;;  %v687_v12 = vld [vmem:[%s747_s24 + $0x10] sm:$0xff]   ;;  %s586_s14 = sshll.u32 %s809_s13, 3 }
   0xf   : > { %637 = vmatprep.mubr.bf16.mxu0 %v685_v4  ;;  %v689_v6 = vld [vmem:[%s747_s24 + $0x20] sm:$0xff]   ;;  %v690_v11 = vld [vmem:[%s747_s24 + $0x28] sm:$0xff]   ;;  %v691_v13 = vld [vmem:[%s747_s24 + $0x30] sm:$0xff]   ;;  %s184_s17 = scalar_lea.vmem %s805_s3, %s586_s14 }
  0x10   : > { %645 = vmatprep.mubr.bf16.mxu1 %v689_v6  ;;  %v688_v14 = vld [vmem:[%s747_s24 + $0x18] sm:$0xff]  }
  0x11   : > { %624 = vmatpush3.bf16.msra.mxu0 %v678_v1  ;;  %662 = vmatpush3.bf16.msra.mxu1 %v678_v1  ;;  %v692_v15 = vld [vmem:[%s747_s24 + $0x38] sm:$0xff]  }
  0x12   : > { %625 = vmatprep.subr.bf16.mxu0 %v679_v2  ;;  %655 = vmatprep.subr.bf16.mxu1 %v679_v2 }
  0x15   : > { %626 = vmatpush3.bf16.msra.mxu0 %v679_v2  ;;  %663 = vmatpush3.bf16.msra.mxu1 %v679_v2 }
  0x16   : > { %627 = vmatprep.subr.bf16.mxu0 %v680_v3  ;;  %656 = vmatprep.subr.bf16.mxu1 %v680_v3 }
  0x19   : > { %628 = vmatpush3.bf16.msra.mxu0 %v680_v3  ;;  %664 = vmatpush3.bf16.msra.mxu1 %v680_v3 }
  0x1a   : > { %629 = vmatprep.subr.bf16.mxu0 %v681_v5  ;;  %657 = vmatprep.subr.bf16.mxu1 %v681_v5 }
  0x1d   : > { %630 = vmatpush3.bf16.msra.mxu0 %v681_v5  ;;  %665 = vmatpush3.bf16.msra.mxu1 %v681_v5 }
  0x1e   : > { %631 = vmatprep.subr.bf16.mxu0 %v682_v7  ;;  %658 = vmatprep.subr.bf16.mxu1 %v682_v7 }
  0x21   : > { %632 = vmatpush3.bf16.msra.mxu0 %v682_v7  ;;  %666 = vmatpush3.bf16.msra.mxu1 %v682_v7 }
  0x22   : > { %633 = vmatprep.subr.bf16.mxu0 %v683_v8  ;;  %659 = vmatprep.subr.bf16.mxu1 %v683_v8 }
  0x25   : > { %634 = vmatpush3.bf16.msra.mxu0 %v683_v8  ;;  %667 = vmatpush3.bf16.msra.mxu1 %v683_v8 }
  0x26   : > { %635 = vmatprep.subr.bf16.mxu0 %v684_v9  ;;  %660 = vmatprep.subr.bf16.mxu1 %v684_v9 }
  0x29   : > { %636 = vmatpush3.bf16.msra.mxu0 %v684_v9  ;;  %668 = vmatpush3.bf16.msra.mxu1 %v684_v9 }
  0x2c   : > { %638 = vmatmul.mubr.bf16.vlgmr.msra.gmra.mxu0 %v686_v10  ;;  %646 = vmatmul.mubr.bf16.vlgmr.msra.gmra.mxu1 %v690_v11 }
  0x2d   : > { %641 = vmatprep.mubr.bf16.mxu0 %v687_v12  ;;  %649 = vmatprep.mubr.bf16.mxu1 %v691_v13 }
  0x34   : > { %642 = vmatmul.mubr.bf16.gmra.mxu0 %v688_v14  ;;  %650 = vmatmul.mubr.bf16.gmra.mxu1 %v692_v15 }
  0xec   : > { %v639_v16 = vpop.f32.mrf.mxu0  ;;  %v647_v17 = vpop.f32.mrf.mxu1 }
  0xed   : > { %413 = vst [vmem:[%s776_s11 + $0x10] sm:$0xff] %v639_v16  ;;  %421 = vst [vmem:[%s776_s11 + $0x50] sm:$0xff] %v647_v17  ;;  %v450_v29 = vmul.f32 %v639_v16, %v639_v16  ;;  %v458_v59 = vmul.f32 %v647_v17, %v647_v17 }
  0xee   : > { %v348_v18 = vpop.f32.mrf.mxu0  ;;  %v380_v19 = vpop.f32.mrf.mxu1 }
  0xef   : > { %411 = vst [vmem:[%s776_s11] sm:$0xff] %v348_v18  ;;  %419 = vst [vmem:[%s776_s11 + $0x40] sm:$0xff] %v380_v19  ;;  %v448_v24 = vmul.f32 %v348_v18, %v348_v18  ;;  %v456_v53 = vmul.f32 %v380_v19, %v380_v19 }
  0xf0   : > { %v640_v20 = vpop.f32.mrf.mxu0  ;;  %v648_v21 = vpop.f32.mrf.mxu1 }
  0xf1   : > { %414 = vst [vmem:[%s776_s11 + $0x18] sm:$0xff] %v640_v20  ;;  %422 = vst [vmem:[%s776_s11 + $0x58] sm:$0xff] %v648_v21  ;;  %v451_v34 = vmul.f32 %v640_v20, %v640_v20  ;;  %v459_v62 = vmul.f32 %v648_v21, %v648_v21 }
  0xf2   : > { %v351_v22 = vpop.f32.mrf.mxu0  ;;  %v383_v23 = vpop.f32.mrf.mxu1 }
  0xf3   : > { %412 = vst [vmem:[%s776_s11 + $0x8] sm:$0xff] %v351_v22  ;;  %v427_v25 = vadd.f32 %v351_v22, %v348_v18  ;;  %v449_v26 = vmul.f32 %v351_v22, %v351_v22  ;;  %420 = vst [vmem:[%s776_s11 + $0x48] sm:$0xff] %v383_v23  ;;  %v457_v57 = vmul.f32 %v383_v23, %v383_v23 }
  0xf4   : > { %v643_v27 = vpop.f32.mrf.mxu0  ;;  %v651_v28 = vpop.f32.mrf.mxu1 }
  0xf5   : > { %v428_v30 = vadd.f32 %v639_v16, %v427_v25  ;;  %v464_v31 = vadd.f32 %v449_v26, %v448_v24  ;;  %417 = vst [vmem:[%s776_s11 + $0x30] sm:$0xff] %v643_v27  ;;  %425 = vst [vmem:[%s776_s11 + $0x70] sm:$0xff] %v651_v28  ;;  %v454_v47 = vmul.f32 %v643_v27, %v643_v27 }
  0xf6   : > { %v364_v32 = vpop.f32.mrf.mxu0  ;;  %v396_v33 = vpop.f32.mrf.mxu1  ;;  %v462_v7 = vmul.f32 %v651_v28, %v651_v28 }
  0xf7   : > { %v465_v35 = vadd.f32 %v464_v31, %v450_v29  ;;  %415 = vst [vmem:[%s776_s11 + $0x20] sm:$0xff] %v364_v32  ;;  %v429_v36 = vadd.f32 %v640_v20, %v428_v30  ;;  %423 = vst [vmem:[%s776_s11 + $0x60] sm:$0xff] %v396_v33  ;;  %v452_v40 = vmul.f32 %v364_v32, %v364_v32 }
  0xf8   : > { %v644_v37 = vpop.f32.mrf.mxu0  ;;  %v652_v38 = vpop.f32.mrf.mxu1  ;;  %v460_v2 = vmul.f32 %v396_v33, %v396_v33 }
  0xf9   : > { %v430_v39 = vadd.f32 %v429_v36, %v364_v32  ;;  %v466_v41 = vadd.f32 %v465_v35, %v451_v34  ;;  %418 = vst [vmem:[%s776_s11 + $0x38] sm:$0xff] %v644_v37  ;;  %426 = vst [vmem:[%s776_s11 + $0x78] sm:$0xff] %v652_v38  ;;  %v455_v50 = vmul.f32 %v644_v37, %v644_v37 }
  0xfa   : > { %v367_v42 = vpop.f32.mrf.mxu0  ;;  %v399_v43 = vpop.f32.mrf.mxu1  ;;  %v463_v10 = vmul.f32 %v652_v38, %v652_v38 }
  0xfb   : > { %v467_v44 = vadd.f32 %v466_v41, %v452_v40  ;;  %416 = vst [vmem:[%s776_s11 + $0x28] sm:$0xff] %v367_v42  ;;  %v431_v45 = vadd.f32 %v430_v39, %v367_v42  ;;  %v453_v46 = vmul.f32 %v367_v42, %v367_v42  ;;  %424 = vst [vmem:[%s776_s11 + $0x68] sm:$0xff] %v399_v43 }
  0xfc   : > { %v461_v6 = vmul.f32 %v399_v43, %v399_v43 }
  0xfd   : > { %v432_v48 = vadd.f32 %v643_v27, %v431_v45  ;;  %v468_v49 = vadd.f32 %v467_v44, %v453_v46 }
  0xff   : > { %v433_v51 = vadd.f32 %v644_v37, %v432_v48  ;;  %v469_v52 = vadd.f32 %v468_v49, %v454_v47 }
 0x101   : > { %v470_v54 = vadd.f32 %v469_v52, %v455_v50  ;;  %v434_v55 = vadd.f32 %v433_v51, %v380_v19 }
 0x103   : > { %v435_v56 = vadd.f32 %v434_v55, %v383_v23  ;;  %v471_v58 = vadd.f32 %v470_v54, %v456_v53 }
 0x105   : > { %v436_v60 = vadd.f32 %v647_v17, %v435_v56  ;;  %v472_v61 = vadd.f32 %v471_v58, %v457_v57 }
 0x107   : > { %v473_v63 = vadd.f32 %v472_v61, %v458_v59  ;;  %v437_v0 = vadd.f32 %v648_v21, %v436_v60 }
 0x109   : > { %v438_v1 = vadd.f32 %v437_v0, %v396_v33  ;;  %v474_v3 = vadd.f32 %v473_v63, %v459_v62 }
 0x10b   : > { %v475_v4 = vadd.f32 %v474_v3, %v460_v2  ;;  %v439_v5 = vadd.f32 %v438_v1, %v399_v43 }
 0x10d   : > { %v440_v8 = vadd.f32 %v651_v28, %v439_v5  ;;  %v476_v9 = vadd.f32 %v475_v4, %v461_v6 }
 0x10f   : > { %v441_v11 = vadd.f32 %v652_v38, %v440_v8  ;;  %v477_v12 = vadd.f32 %v476_v9, %v462_v7 }
 0x111   : > { %v442_v13 = vrot.slane %v441_v11, 4  ;;  %v478_v14 = vadd.f32 %v477_v12, %v463_v10 }
 0x113   : > { %v443_v15 = vadd.f32 %v442_v13, %v441_v11  ;;  %v479_v16 = vrot.slane %v478_v14, 4 }
 0x115   : > { %v444_v17 = vrot.slane %v443_v15, 2  ;;  %v480_v18 = vadd.f32 %v479_v16, %v478_v14 }
 0x117   : > { %v445_v19 = vadd.f32 %v444_v17, %v443_v15  ;;  %v481_v20 = vrot.slane %v480_v18, 2 }
 0x119   : > { %v446_v21 = vrot.slane %v445_v19, 1  ;;  %v482_v22 = vadd.f32 %v481_v20, %v480_v18 }
 0x11b   : > { %v483_v23 = vrot.slane %v482_v22, 1  ;;  %v447_v24 = vadd.f32 %v446_v21, %v445_v19 }
 0x11d   : > { %v484_v25 = vadd.f32 %v483_v23, %v482_v22 }
 0x11f   : > { %v486_v26 = vsel %vm485_vm0, %v447_v24, %v484_v25 }
 0x120   : > { %v488_v27 = vsel %vm487_vm1, %v486_v26, 0.0 }
 0x121   : > { %489 = vst [vmem:[%s184_s17] sm:$0xff] %v488_v27 }
 0x122 PF: > { %s14_s12 = sadd.s32 1, %s699_s12  }
 0x123   : > { %p11_p5 = scmp.ge.s32.totalorder %s14_s12, 6  }
 0x125   :  { %13 = sbr.rel (!%p11_p5) target bundleno = 1 (0x1), region = 70 }

// kernel: block_forward.7
= control target key start
LH: loop header
LB: loop body
LE: loop exit
PB: predicated region body
PF: predicated region fallthrough
CT: control target
= control target key end

     0   :  { %s473_s15 = smov 0   ;;  %s594_s0 = inlined_call_operand.vmem [shape: f32[512,128], index: 0, kind: input, shape index: {}]   ;;  %s595_s1 = inlined_call_operand.vmem [shape: f32[1,128], index: 1, kind: input, shape index: {}]   ;;  %s596_s2 = inlined_call_operand.vmem [shape: f32[1,128], index: 2, kind: input, shape index: {}]   ;;  %s597_s3 = inlined_call_operand.vmem [shape: f32[512,128], index: 3, kind: input, shape index: {}]   ;;  %s598_s4 = inlined_call_operand.vmem [shape: f32[512,128], index: 4, kind: output, shape index: {}]  }
   0x1 LB: > { %s417_s16 = sadd.s32 4294967295, %s446_s15   ;;  %p421_p0 = scmp.ge.s32.totalorder %s446_s15, 1  ;;  %s446_s15 = sphi %s473_s15, %s14_s15  }
   0x2   : > { %p174_p1 = scmp.lt.s32.totalorder %s446_s15, 5 }
   0x4   : > { %p175_p2 = pnand %p421_p0, %p174_p1 }
   0x5   : > { %s422_s17 = sshll.u32 (!%p175_p2), %s417_s16, 4 }
   0x6   : > { %178 = sbr.rel (%p175_p2) target bundleno = 36 (0x24), region = 36  ;;  %p206_p3 = scmp.lt.s32.totalorder (!%p175_p2), %s422_s17, 63 }
   0xb   : > { %s600_s17 = smov (!%p206_p3, %s422_s17), 63  ;;  %v486_v0 = vld [vmem:[%s595_s1] ss:$0 sm:$0xff] }
   0xc   : > { %s481_s18 = sshll.u32 %s600_s17, 3  ;;  %v504_v2 = vld [vmem:[%s596_s2] ss:$0 sm:$0xff] }
   0xd   : > { %s492_s23 = scalar_lea.vmem %s594_s0, %s481_s18  ;;  %s498_s26 = scalar_lea.vmem %s597_s3, %s481_s18 }
   0xe   : > { %v223_v1 = vld [vmem:[%s492_s23] sm:$0xff]  ;;  %v224_v3 = vld [vmem:[%s492_s23 + $0x8] sm:$0xff]  ;;  %v225_v6 = vld [vmem:[%s492_s23 + $0x10] sm:$0xff]  ;;  %s532_s5 = scalar_lea.vmem %s598_s4, %s481_s18 }
   0xf   : > { %v246_v4 = vmul.f32 %v486_v0, %v223_v1  ;;  %v247_v5 = vmul.f32 %v486_v0, %v224_v3  ;;  %v248_v7 = vmul.f32 %v486_v0, %v225_v6  ;;  %v226_v8 = vld [vmem:[%s492_s23 + $0x18] sm:$0xff]  ;;  %v227_v9 = vld [vmem:[%s492_s23 + $0x20] sm:$0xff]  ;;  %v228_v15 = vld [vmem:[%s492_s23 + $0x28] sm:$0xff] }
  0x10   : > { %v301_v11 = vld [vmem:[%s498_s26] sm:$0xff]  ;;  %v249_v13 = vmul.f32 %v486_v0, %v226_v8  ;;  %v250_v14 = vmul.f32 %v486_v0, %v227_v9  ;;  %v302_v16 = vld [vmem:[%s498_s26 + $0x8] sm:$0xff]  ;;  %v251_v18 = vmul.f32 %v486_v0, %v228_v15  ;;  %v229_v19 = vld [vmem:[%s492_s23 + $0x30] sm:$0xff] }
  0x11   : > { %v269_v10 = vadd.f32 %v504_v2, %v246_v4  ;;  %v270_v12 = vadd.f32 %v504_v2, %v247_v5  ;;  %v271_v17 = vadd.f32 %v504_v2, %v248_v7  ;;  %v230_v20 = vld [vmem:[%s492_s23 + $0x38] sm:$0xff]  ;;  %v303_v23 = vld [vmem:[%s498_s26 + $0x10] sm:$0xff]  ;;  %v305_v28 = vld [vmem:[%s498_s26 + $0x20] sm:$0xff]  ;;  %v252_v30 = vmul.f32 %v486_v0, %v229_v19 }
  0x12   : > { %v272_v24 = vadd.f32 %v504_v2, %v249_v13  ;;  %v304_v25 = vld [vmem:[%s498_s26 + $0x18] sm:$0xff]  ;;  %v273_v26 = vadd.f32 %v504_v2, %v250_v14  ;;  %v274_v29 = vadd.f32 %v504_v2, %v251_v18  ;;  %v253_v31 = vmul.f32 %v486_v0, %v230_v20  ;;  %v231_v32 = vld [vmem:[%s492_s23 + $0x40] sm:$0xff]  ;;  %v232_v33 = vld [vmem:[%s492_s23 + $0x48] sm:$0xff] }
  0x13   : > { %v285_v21 = vmax.f32 %v269_v10, 0.0  ;;  %v286_v22 = vmax.f32 %v270_v12, 0.0  ;;  %v287_v27 = vmax.f32 %v271_v17, 0.0  ;;  %v306_v38 = vld [vmem:[%s498_s26 + $0x28] sm:$0xff]  ;;  %v233_v39 = vld [vmem:[%s492_s23 + $0x50] sm:$0xff]  ;;  %v275_v42 = vadd.f32 %v504_v2, %v252_v30  ;;  %v234_v44 = vld [vmem:[%s492_s23 + $0x58] sm:$0xff] }
  0x14   : > { %v288_v36 = vmax.f32 %v272_v24, 0.0  ;;  %v289_v37 = vmax.f32 %v273_v26, 0.0  ;;  %v290_v41 = vmax.f32 %v274_v29, 0.0  ;;  %v276_v43 = vadd.f32 %v504_v2, %v253_v31  ;;  %v235_v45 = vld [vmem:[%s492_s23 + $0x60] sm:$0xff]  ;;  %v307_v48 = vld [vmem:[%s498_s26 + $0x30] sm:$0xff]  ;;  %v308_v49 = vld [vmem:[%s498_s26 + $0x38] sm:$0xff] }
  0x15   : > { %v317_v34 = vadd.f32 %v301_v11, %v285_v21  ;;  %v318_v35 = vadd.f32 %v302_v16, %v286_v22  ;;  %v319_v40 = vadd.f32 %v303_v23, %v287_v27  ;;  %v254_v50 = vmul.f32 %v486_v0, %v231_v32  ;;  %v236_v52 = vld [vmem:[%s492_s23 + $0x68] sm:$0xff]  ;;  %v237_v61 = vld [vmem:[%s492_s23 + $0x70] sm:$0xff]  ;;  %v238_v62 = vld [vmem:[%s492_s23 + $0x78] sm:$0xff] }
  0x16   : > { %v320_v46 = vadd.f32 %v304_v25, %v288_v36  ;;  %v321_v47 = vadd.f32 %v305_v28, %v289_v37  ;;  %v255_v51 = vmul.f32 %v486_v0, %v232_v33  ;;  %v322_v53 = vadd.f32 %v306_v38, %v290_v41  ;;  %v309_v3 = vld [vmem:[%s498_s26 + $0x40] sm:$0xff]  ;;  %v310_v4 = vld [vmem:[%s498_s26 + $0x48] sm:$0xff]  ;;  %v311_v9 = vld [vmem:[%s498_s26 + $0x50] sm:$0xff] }
  0x17   : > { %333 = vst [vmem:[%s532_s5] sm:$0xff] %v317_v34  ;;  %334 = vst [vmem:[%s532_s5 + $0x8] sm:$0xff] %v318_v35  ;;  %v291_v54 = vmax.f32 %v275_v42, 0.0  ;;  %v292_v55 = vmax.f32 %v276_v43, 0.0  ;;  %v256_v56 = vmul.f32 %v486_v0, %v233_v39  ;;  %v277_v57 = vadd.f32 %v504_v2, %v254_v50  ;;  %v312_v13 = vld [vmem:[%s498_s26 + $0x58] sm:$0xff]  ;;  %v313_v14 = vld [vmem:[%s498_s26 + $0x60] sm:$0xff] }
  0x18   : > { %335 = vst [vmem:[%s532_s5 + $0x10] sm:$0xff] %v319_v40  ;;  %336 = vst [vmem:[%s532_s5 + $0x18] sm:$0xff] %v320_v46  ;;  %v278_v58 = vadd.f32 %v504_v2, %v255_v51  ;;  %v257_v59 = vmul.f32 %v486_v0, %v234_v44  ;;  %v258_v60 = vmul.f32 %v486_v0, %v235_v45  ;;  %v314_v22 = vld [vmem:[%s498_s26 + $0x68] sm:$0xff]  ;;  %v315_v28 = vld [vmem:[%s498_s26 + $0x70] sm:$0xff] }
  0x19   : > { %337 = vst [vmem:[%s532_s5 + $0x20] sm:$0xff] %v321_v47  ;;  %338 = vst [vmem:[%s532_s5 + $0x28] sm:$0xff] %v322_v53  ;;  %v323_v63 = vadd.f32 %v307_v48, %v291_v54  ;;  %v324_v1 = vadd.f32 %v308_v49, %v292_v55  ;;  %v279_v5 = vadd.f32 %v504_v2, %v256_v56  ;;  %v293_v7 = vmax.f32 %v277_v57, 0.0  ;;  %v316_v29 = vld [vmem:[%s498_s26 + $0x78] sm:$0xff] }
  0x1a   : > { %v259_v6 = vmul.f32 %v486_v0, %v236_v52  ;;  %v294_v8 = vmax.f32 %v278_v58, 0.0  ;;  %v280_v10 = vadd.f32 %v504_v2, %v257_v59  ;;  %v281_v11 = vadd.f32 %v504_v2, %v258_v60 }
  0x1b   : > { %339 = vst [vmem:[%s532_s5 + $0x30] sm:$0xff] %v323_v63  ;;  %340 = vst [vmem:[%s532_s5 + $0x38] sm:$0xff] %v324_v1  ;;  %v295_v12 = vmax.f32 %v279_v5, 0.0  ;;  %v260_v16 = vmul.f32 %v486_v0, %v237_v61  ;;  %v261_v17 = vmul.f32 %v486_v0, %v238_v62  ;;  %v325_v18 = vadd.f32 %v309_v3, %v293_v7 }
  0x1c   : > { %v282_v15 = vadd.f32 %v504_v2, %v259_v6  ;;  %v326_v19 = vadd.f32 %v310_v4, %v294_v8  ;;  %v296_v20 = vmax.f32 %v280_v10, 0.0  ;;  %v297_v21 = vmax.f32 %v281_v11, 0.0 }
  0x1d   : > { %v327_v23 = vadd.f32 %v311_v9, %v295_v12  ;;  %v283_v25 = vadd.f32 %v504_v2, %v260_v16  ;;  %v284_v26 = vadd.f32 %v504_v2, %v261_v17  ;;  %341 = vst [vmem:[%s532_s5 + $0x40] sm:$0xff] %v325_v18 }
  0x1e   : > { %v298_v24 = vmax.f32 %v282_v15, 0.0  ;;  %342 = vst [vmem:[%s532_s5 + $0x48] sm:$0xff] %v326_v19  ;;  %v328_v0 = vadd.f32 %v312_v13, %v296_v20  ;;  %v329_v27 = vadd.f32 %v313_v14, %v297_v21 }
  0x1f   : > { %343 = vst [vmem:[%s532_s5 + $0x50] sm:$0xff] %v327_v23  ;;  %v299_v31 = vmax.f32 %v283_v25, 0.0  ;;  %v300_v32 = vmax.f32 %v284_v26, 0.0 }
  0x20   : > { %v330_v30 = vadd.f32 %v314_v22, %v298_v24  ;;  %344 = vst [vmem:[%s532_s5 + $0x58] sm:$0xff] %v328_v0  ;;  %345 = vst [vmem:[%s532_s5 + $0x60] sm:$0xff] %v329_v27 }
  0x21   : > { %v331_v33 = vadd.f32 %v315_v28, %v299_v31  ;;  %v332_v34 = vadd.f32 %v316_v29, %v300_v32 }
  0x22   : > { %346 = vst [vmem:[%s532_s5 + $0x68] sm:$0xff] %v330_v30 }
  0x23   : > { %347 = vst [vmem:[%s532_s5 + $0x70] sm:$0xff] %v331_v33  ;;  %348 = vst [vmem:[%s532_s5 + $0x78] sm:$0xff] %v332_v34 }
  0x24 PF: > { %s14_s15 = sadd.s32 1, %s446_s15  }
  0x25   : > { %p11_p4 = scmp.ge.s32.totalorder %s14_s15, 6  }
  0x27   :  { %13 = sbr.rel (!%p11_p4) target bundleno = 1 (0x1), region = 69 }

</bundles_post_ra>
